<compile_context>
chip_gen: v7x
topology: tpu7x:2x2x1
jax: 0.10.0
libtpu: 0.0.40
codegen_flags: <defaults>
</compile_context>

<pallas_src>
import functools

import jax
import jax.numpy as jnp
import numpy as np
from jax.experimental import pallas as pl
from jax.experimental.pallas import tpu as pltpu


def _round_up(x, m):
    return ((x + m - 1) // m) * m


# ----------------------------------------------------------------------------
# Kernel 1: fused K + V projection (context read once, two outputs)
# ----------------------------------------------------------------------------
def _kv_proj_kernel(c_ref, wk_ref, wv_ref, k_ref, v_ref):
    c = c_ref[...]
    k_ref[...] = jnp.dot(c, wk_ref[...],
                         preferred_element_type=jnp.float32).astype(k_ref.dtype)
    v_ref[...] = jnp.dot(c, wv_ref[...],
                         preferred_element_type=jnp.float32).astype(v_ref.dtype)


def _kv_proj(ctx, wk_h, wv_h, row_blk):
    """ctx: [B, Mp, Din], wk_h/wv_h: [H, Din, dh] -> (k, v): [B, H, Mp, dh]."""
    B, Mp, Din = ctx.shape
    H, _, dh = wk_h.shape
    kv_spec = pl.BlockSpec((None, None, row_blk, dh), lambda b, i, h: (b, h, i, 0))
    return pl.pallas_call(
        _kv_proj_kernel,
        out_shape=(jax.ShapeDtypeStruct((B, H, Mp, dh), ctx.dtype),
                   jax.ShapeDtypeStruct((B, H, Mp, dh), ctx.dtype)),
        grid=(B, Mp // row_blk, H),
        in_specs=[
            # ctx block index is independent of h (innermost axis) -> Pallas
            # skips the re-DMA, so the context tile is fetched once per (b, i).
            pl.BlockSpec((None, row_blk, Din), lambda b, i, h: (b, i, 0)),
            pl.BlockSpec((None, Din, dh), lambda b, i, h: (h, 0, 0)),
            pl.BlockSpec((None, Din, dh), lambda b, i, h: (h, 0, 0)),
        ],
        out_specs=(kv_spec, kv_spec),
        compiler_params=pltpu.CompilerParams(
            dimension_semantics=("parallel", "parallel", "arbitrary")),
    )(ctx, wk_h, wv_h)


# ----------------------------------------------------------------------------
# Kernel 2: fused q-projection + flash attention + output projection
# ----------------------------------------------------------------------------
def _fused_attn_kernel(x_ref, wq_ref, k_ref, v_ref, wo_ref, b_ref, o_ref,
                       q_s, m_s, l_s, acc_s, out_s, *, kv_len, kv_blk):
    h = pl.program_id(2)
    ki = pl.program_id(3)
    nh = pl.num_programs(2)
    nk = pl.num_programs(3)

    @pl.when((h == 0) & (ki == 0))
    def _init_out():
        out_s[...] = jnp.zeros_like(out_s)

    @pl.when(ki == 0)
    def _init_head():
        # Per-head q projection (scale already folded into wq).
        q_s[...] = jnp.dot(x_ref[...], wq_ref[...],
                           preferred_element_type=jnp.float32).astype(q_s.dtype)
        m_s[...] = jnp.full_like(m_s, -jnp.inf)
        l_s[...] = jnp.zeros_like(l_s)
        acc_s[...] = jnp.zeros_like(acc_s)

    # sim tile: [q_blk, kv_blk]
    s = jax.lax.dot_general(q_s[...], k_ref[...], (((1,), (1,)), ((), ())),
                            preferred_element_type=jnp.float32)

    if kv_len % kv_blk:                  # static: only if context was zero-padded
        col = jax.lax.broadcasted_iota(jnp.int32, s.shape, 1) + ki * kv_blk
        s = jnp.where(col < kv_len, s, -1e30)

    m_prev = m_s[...]
    m_new = jnp.maximum(m_prev, jnp.max(s, axis=-1, keepdims=True))
    alpha = jnp.exp(m_prev - m_new)
    p = jnp.exp(s - m_new)
    l_s[...] = alpha * l_s[...] + jnp.sum(p, axis=-1, keepdims=True)
    acc_s[...] = alpha * acc_s[...] + jnp.dot(
        p.astype(v_ref.dtype), v_ref[...], preferred_element_type=jnp.float32)
    m_s[...] = m_new

    @pl.when(ki == nk - 1)
    def _head_done():
        # Normalize this head's result and fold it into the head-summed
        # output accumulator (out = sum_h attn_h @ Wo_h).
        attn = acc_s[...] * pl.reciprocal(l_s[...], approx=True)
        out_s[...] += jnp.dot(attn.astype(wo_ref.dtype), wo_ref[...],
                              preferred_element_type=jnp.float32)

    @pl.when((h == nh - 1) & (ki == nk - 1))
    def _fin():
        o_ref[...] = (out_s[...] + b_ref[...].astype(jnp.float32)).astype(o_ref.dtype)


def _fused_attention(x, wq_h, k, v, wo_h, b_o2d, *, kv_len, q_blk, kv_blk):
    """x: [B,Np,Dq_in], wq_h: [H,Dq_in,dh], k/v: [B,H,Mp,dh],
    wo_h: [H,dh,Dq], b: [1,Dq] -> [B,Np,Dq]."""
    B, Np, Din = x.shape
    H, _, dh = wq_h.shape
    Dq = wo_h.shape[-1]
    Mp = k.shape[2]
    kern = functools.partial(_fused_attn_kernel, kv_len=kv_len, kv_blk=kv_blk)
    return pl.pallas_call(
        kern,
        out_shape=jax.ShapeDtypeStruct((B, Np, Dq), x.dtype),
        grid=(B, Np // q_blk, H, Mp // kv_blk),
        in_specs=[
            # x tile: independent of (h, ki) -> fetched once per (b, q-tile).
            pl.BlockSpec((None, q_blk, Din), lambda b, qi, h, ki: (b, qi, 0)),
            # per-head weights: independent of ki -> fetched once per head.
            pl.BlockSpec((None, Din, dh), lambda b, qi, h, ki: (h, 0, 0)),
            pl.BlockSpec((None, None, kv_blk, dh), lambda b, qi, h, ki: (b, h, ki, 0)),
            pl.BlockSpec((None, None, kv_blk, dh), lambda b, qi, h, ki: (b, h, ki, 0)),
            pl.BlockSpec((None, dh, Dq), lambda b, qi, h, ki: (h, 0, 0)),
            pl.BlockSpec((1, Dq), lambda b, qi, h, ki: (0, 0)),
        ],
        out_specs=pl.BlockSpec((None, q_blk, Dq), lambda b, qi, h, ki: (b, qi, 0)),
        scratch_shapes=[
            pltpu.VMEM((q_blk, dh), x.dtype),       # per-head q tile
            pltpu.VMEM((q_blk, 1), jnp.float32),    # running max
            pltpu.VMEM((q_blk, 1), jnp.float32),    # running sum
            pltpu.VMEM((q_blk, dh), jnp.float32),   # per-head attention accumulator
            pltpu.VMEM((q_blk, Dq), jnp.float32),   # head-summed output accumulator
        ],
        compiler_params=pltpu.CompilerParams(
            dimension_semantics=("parallel", "parallel", "arbitrary", "arbitrary")),
    )(x, wq_h, k, v, wo_h, b_o2d)


# ----------------------------------------------------------------------------
# Module wrapper
# ----------------------------------------------------------------------------
class PatchedCrossAttentionPallas:
    def __init__(self, query_dim, context_dim=None, heads=8, dim_head=64,
                 dropout=0.0, key=None, dtype=jnp.float32):
        if key is None:
            key = jax.random.PRNGKey(0)
        inner_dim = dim_head * heads
        context_dim = context_dim or query_dim
        self.heads = heads
        self.dim_head = dim_head
        self.scale = dim_head ** (-0.5)
        self.query_dim = query_dim
        self.context_dim = context_dim

        kq, kk, kv, ko, kb = jax.random.split(key, 5)
        # Canonical [in, out] weights (used only by the pure-JAX reference).
        self.w_q = (0.02 * jax.random.normal(kq, (query_dim, inner_dim))).astype(dtype)
        self.w_k = (0.02 * jax.random.normal(kk, (context_dim, inner_dim))).astype(dtype)
        self.w_v = (0.02 * jax.random.normal(kv, (context_dim, inner_dim))).astype(dtype)
        self.w_o = (0.02 * jax.random.normal(ko, (inner_dim, query_dim))).astype(dtype)
        self.b_o = (0.02 * jax.random.normal(kb, (query_dim,))).astype(dtype)

        # Kernel-friendly layouts (one-time host-side reshape/transpose so the
        # forward pass never rearranges activations through HBM):
        #   [Din, H*dh] -> [H, Din, dh]          (q/k/v)
        #   [H*dh, Dq]  -> [H, dh, Dq]           (out)
        # scale folded into Wq.
        self.w_q_h = (self.w_q * self.scale).reshape(
            query_dim, heads, dim_head).transpose(1, 0, 2)
        self.w_k_h = self.w_k.reshape(context_dim, heads, dim_head).transpose(1, 0, 2)
        self.w_v_h = self.w_v.reshape(context_dim, heads, dim_head).transpose(1, 0, 2)
        self.w_o_h = self.w_o.reshape(heads, dim_head, query_dim)
        self.b_o2d = self.b_o.reshape(1, query_dim)
        # Dropout is identity in eval mode (inference), so it is omitted.

    def __call__(self, x, context=None, mask=None):
        if mask is not None:
            # TODO(synk): attention mask path (masked_fill before softmax) not implemented.
            raise NotImplementedError("mask is not supported in this kernel")
        context = x if context is None else context
        B, N, _ = x.shape
        M = context.shape[1]

        # Tile planning: query rows tiled at <=256 (multiple of 8), KV rows
        # tiled at a lane-dense multiple of 128 (pad + mask the remainder).
        q_blk = min(256, _round_up(N, 8))
        kv_blk = min(256, _round_up(M, 128))
        Np = _round_up(N, q_blk)
        Mp = _round_up(M, kv_blk)

        xp = jnp.pad(x, ((0, 0), (0, Np - N), (0, 0))) if Np != N else x
        ctx = jnp.pad(context, ((0, 0), (0, Mp - M), (0, 0))) if Mp != M else context

        k, v = _kv_proj(ctx, self.w_k_h, self.w_v_h, kv_blk)       # [B,H,Mp,dh]
        y = _fused_attention(xp, self.w_q_h, k, v, self.w_o_h, self.b_o2d,
                             kv_len=M, q_blk=q_blk, kv_blk=kv_blk)  # [B,Np,Dq]
        return y[:, :N, :] if Np != N else y


# ----------------------------------------------------------------------------
# Pure-JAX reference (for verification)
# ----------------------------------------------------------------------------
def _reference(mod, x, context=None):
    B, N, Dq = x.shape
    context = x if context is None else context
    M = context.shape[1]
    H, dh = mod.heads, mod.dim_head
    q = (x @ mod.w_q).reshape(B, N, H, dh).transpose(0, 2, 1, 3)
    k = (context @ mod.w_k).reshape(B, M, H, dh).transpose(0, 2, 1, 3)
    v = (context @ mod.w_v).reshape(B, M, H, dh).transpose(0, 2, 1, 3)
    sim = jnp.einsum("bhid,bhjd->bhij", q, k) * mod.scale
    attn = jax.nn.softmax(sim, axis=-1)
    out = jnp.einsum("bhij,bhjd->bhid", attn, v)
    out = out.transpose(0, 2, 1, 3).reshape(B, N, H * dh)
    return out @ mod.w_o + mod.b_o


if __name__ == "__main__":
    key = jax.random.PRNGKey(0)
    k_param, k_param2, k_x, k_ctx = jax.random.split(key, 4)

    B, N, M = 2, 16, 8
    query_dim, context_dim = 32, 48
    heads, dim_head = 2, 64

    x = jax.random.normal(k_x, (B, N, query_dim), jnp.float32)
    context = jax.random.normal(k_ctx, (B, M, context_dim), jnp.float32)

    # Cross-attention path.
    mod = PatchedCrossAttentionPallas(query_dim, context_dim, heads=heads,
                                      dim_head=dim_head, key=k_param)
    y = jax.block_until_ready(mod(x, context))
    y_ref = jax.block_until_ready(_reference(mod, x, context))
    np.testing.assert_allclose(np.asarray(y), np.asarray(y_ref),
                               rtol=2e-2, atol=2e-3)

    # Self-attention path (context=None).
    mod_self = PatchedCrossAttentionPallas(query_dim, None, heads=heads,
                                           dim_head=dim_head, key=k_param2)
    y2 = jax.block_until_ready(mod_self(x))
    y2_ref = jax.block_until_ready(_reference(mod_self, x, None))
    np.testing.assert_allclose(np.asarray(y2), np.asarray(y2_ref),
                               rtol=2e-2, atol=2e-3)

    print("KERNEL_OK")
</pallas_src>

<mosaic_0001>
module attributes {stable_mosaic.version = 11 : i64} {
  func.func @_kv_proj_kernel(%arg0: i32, %arg1: i32, %arg2: i32, %arg3: memref<1x128x48xf32, #tpu.memory_space<vmem>>, %arg4: memref<1x48x64xf32, #tpu.memory_space<vmem>>, %arg5: memref<1x48x64xf32, #tpu.memory_space<vmem>>, %arg6: memref<1x1x128x64xf32, #tpu.memory_space<vmem>>, %arg7: memref<1x1x128x64xf32, #tpu.memory_space<vmem>>) attributes {dimension_semantics = [#tpu.dimension_semantics<parallel>, #tpu.dimension_semantics<parallel>, #tpu.dimension_semantics<arbitrary>], iteration_bounds = array<i64: 2, 1, 2>, scalar_prefetch = 0 : i64, scratch_operands = 0 : i64, tpu.core_type = #tpu.core_type<tc>, window_params = [{transform_indices = @transform_0, window_bounds = array<i64: 1, 128, 48>}, {transform_indices = @transform_1, window_bounds = array<i64: 1, 48, 64>}, {transform_indices = @transform_2, window_bounds = array<i64: 1, 48, 64>}, {transform_indices = @transform_3, window_bounds = array<i64: 1, 1, 128, 64>}, {transform_indices = @transform_4, window_bounds = array<i64: 1, 1, 128, 64>}]} {
    %c0 = arith.constant 0 : index
    %c0_0 = arith.constant 0 : index
    %c0_1 = arith.constant 0 : index
    %0 = vector.load %arg3[%c0, %c0_0, %c0_1] : memref<1x128x48xf32, #tpu.memory_space<vmem>>, vector<1x128x48xf32>
    %1 = vector.shape_cast %0 : vector<1x128x48xf32> to vector<128x48xf32>
    %c0_2 = arith.constant 0 : index
    %c0_3 = arith.constant 0 : index
    %c0_4 = arith.constant 0 : index
    %2 = vector.load %arg4[%c0_2, %c0_3, %c0_4] : memref<1x48x64xf32, #tpu.memory_space<vmem>>, vector<1x48x64xf32>
    %3 = vector.shape_cast %2 : vector<1x48x64xf32> to vector<48x64xf32>
    %cst = arith.constant dense<0.000000e+00> : vector<128x64xf32>
    %4 = tpu.matmul %1, %3, %cst {dimension_numbers = #tpu.dot_dimension_numbers<[1], [0], [0], [1], [0, 0, 1, 1], [], []>} : vector<128x48xf32>, vector<48x64xf32>, vector<128x64xf32> -> vector<128x64xf32>
    %c0_5 = arith.constant 0 : index
    %c0_6 = arith.constant 0 : index
    %c0_7 = arith.constant 0 : index
    %c0_8 = arith.constant 0 : index
    %5 = vector.load %arg6[%c0_5, %c0_6, %c0_7, %c0_8] : memref<1x1x128x64xf32, #tpu.memory_space<vmem>>, vector<1x1x128x64xf32>
    %6 = vector.shape_cast %5 : vector<1x1x128x64xf32> to vector<128x64xf32>
    %7 = vector.shape_cast %4 : vector<128x64xf32> to vector<1x1x128x64xf32>
    tpu.vector_store %arg6[%c0_5, %c0_6, %c0_7, %c0_8], %7 {strides = array<i32>} : memref<1x1x128x64xf32, #tpu.memory_space<vmem>>, vector<1x1x128x64xf32>,
    %c0_9 = arith.constant 0 : index
    %c0_10 = arith.constant 0 : index
    %c0_11 = arith.constant 0 : index
    %8 = vector.load %arg5[%c0_9, %c0_10, %c0_11] : memref<1x48x64xf32, #tpu.memory_space<vmem>>, vector<1x48x64xf32>
    %9 = vector.shape_cast %8 : vector<1x48x64xf32> to vector<48x64xf32>
    %cst_12 = arith.constant dense<0.000000e+00> : vector<128x64xf32>
    %10 = tpu.matmul %1, %9, %cst_12 {dimension_numbers = #tpu.dot_dimension_numbers<[1], [0], [0], [1], [0, 0, 1, 1], [], []>} : vector<128x48xf32>, vector<48x64xf32>, vector<128x64xf32> -> vector<128x64xf32>
    %c0_13 = arith.constant 0 : index
    %c0_14 = arith.constant 0 : index
    %c0_15 = arith.constant 0 : index
    %c0_16 = arith.constant 0 : index
    %11 = vector.load %arg7[%c0_13, %c0_14, %c0_15, %c0_16] : memref<1x1x128x64xf32, #tpu.memory_space<vmem>>, vector<1x1x128x64xf32>
    %12 = vector.shape_cast %11 : vector<1x1x128x64xf32> to vector<128x64xf32>
    %13 = vector.shape_cast %10 : vector<128x64xf32> to vector<1x1x128x64xf32>
    tpu.vector_store %arg7[%c0_13, %c0_14, %c0_15, %c0_16], %13 {strides = array<i32>} : memref<1x1x128x64xf32, #tpu.memory_space<vmem>>, vector<1x1x128x64xf32>,
    return
  }
  func.func @transform_0(%arg0: i32, %arg1: i32, %arg2: i32) -> (i32, i32, i32) {
    %c0_i32 = arith.constant 0 : i32
    %c0_i32_0 = arith.constant 0 : i32
    return %arg0, %arg1, %c0_i32 : i32, i32, i32
  }
  func.func @transform_1(%arg0: i32, %arg1: i32, %arg2: i32) -> (i32, i32, i32) {
    %c0_i32 = arith.constant 0 : i32
    %c0_i32_0 = arith.constant 0 : i32
    %c0_i32_1 = arith.constant 0 : i32
    return %arg2, %c0_i32, %c0_i32_0 : i32, i32, i32
  }
  func.func @transform_2(%arg0: i32, %arg1: i32, %arg2: i32) -> (i32, i32, i32) {
    %c0_i32 = arith.constant 0 : i32
    %c0_i32_0 = arith.constant 0 : i32
    %c0_i32_1 = arith.constant 0 : i32
    return %arg2, %c0_i32, %c0_i32_0 : i32, i32, i32
  }
  func.func @transform_3(%arg0: i32, %arg1: i32, %arg2: i32) -> (i32, i32, i32, i32) {
    %c0_i32 = arith.constant 0 : i32
    %c0_i32_0 = arith.constant 0 : i32
    return %arg0, %arg2, %arg1, %c0_i32 : i32, i32, i32, i32
  }
  func.func @transform_4(%arg0: i32, %arg1: i32, %arg2: i32) -> (i32, i32, i32, i32) {
    %c0_i32 = arith.constant 0 : i32
    %c0_i32_0 = arith.constant 0 : i32
    return %arg0, %arg2, %arg1, %c0_i32 : i32, i32, i32, i32
  }
}

</mosaic_0001>

<bundles_post_ra>
// kernel: tpu_custom_call.1
= control target key start
LH: loop header
LB: loop body
LE: loop exit
PB: predicated region body
PF: predicated region fallthrough
CT: control target
= control target key end

     0   :  { %s1223_s15 = smov 0   ;;  %s1225_s16 = smov 0   ;;  %s1404_s0 = inlined_call_operand.vmem [shape: f32[2,128,48], index: 0, kind: input, shape index: {}]   ;;  %s1405_s1 = inlined_call_operand.vmem [shape: f32[2,48,64], index: 1, kind: input, shape index: {}]   ;;  %s1406_s2 = inlined_call_operand.vmem [shape: f32[2,48,64], index: 2, kind: input, shape index: {}]   ;;  %s1407_s3 = inlined_call_operand.vmem [shape: f32[2,2,128,64], index: 3, kind: output, shape index: {0}]   ;;  %s1408_s4 = inlined_call_operand.vmem [shape: f32[2,2,128,64], index: 4, kind: output, shape index: {1}]  }
   0x1   :  { %s1227_s17 = smov 0   ;;  %s1229_s18 = smov 0  }
   0x2   :  { %s1231_s19 = smov 0  }
   0x3 LB: > { %s27_s20 = sadd.s32 1, %s1188_s17  ;;  %s34_s21 = sadd.s32 1, %s1192_s18  ;;  %s1196_s19 = sphi %s1231_s19, %s15_s19   ;;  %s1192_s18 = sphi %s1229_s18, %s1412_s18   ;;  %s1188_s17 = sphi %s1227_s17, %s1411_s17   ;;  %s1184_s16 = sphi %s1225_s16, %s1410_s16   ;;  %s1180_s15 = sphi %s1223_s15, %s1409_s15  }
   0x4   : > { %p28_p0 = scmp.ge.s32.totalorder %s27_s20, 2  ;;  %p931_p1 = scmp.ge.s32.totalorder %s1196_s19, 1 }
   0x5   : > { %p219_p2 = scmp.lt.s32.totalorder %s1196_s19, 5 }
   0x6   : > { %s1414_s20 = smov (%p28_p0, %s27_s20), 0  ;;  %s1416_s21 = smov (!%p28_p0, %s34_s21), %s1192_s18 }
   0x7   : > { %p220_p3 = pnand %p931_p1, %p219_p2  ;;  %p36_p4 = scmp.ge.s32.totalorder %s1416_s21, 2 }
   0x8   : > { %p281_p5 = scmp.lt.s32.totalorder (!%p220_p3), %s1184_s16, 1  ;;  %p290_p6 = scmp.lt.s32.totalorder (!%p220_p3), %s1180_s15, 1  ;;  %vm350_vm0 = vcmask (!%p220_p3), 392192   ;;  %vm544_vm1 = vcmask (!%p220_p3), 523264  }
   0x9   : > { %s1418_s21 = smov (%p36_p4, %s1416_s21), 0  ;;  %223 = sbr.rel (%p220_p3) target bundleno = 279 (0x117), region = 32 }
  0x10   : > { %s1420_s16 = smov (!%p281_p5, %s1184_s16), 1  ;;  %s1422_s15 = smov (!%p290_p6, %s1180_s15), 1 }
  0x11   : > { %s976_s22 = sshll.u32 %s1420_s16, 7  ;;  %s937_s23 = sshll.u32 %s1420_s16, 5 }
  0x12   : > { %s1256_s26 = scalar_lea.vmem %s1404_s0, %s976_s22  ;;  %s1117_s27 = smul.u32 48, %s1422_s15 }
  0x13   : > { %s936_s28 = sshll.u32 %s1422_s15, 4  ;;  %v328_v0 = vld [vmem:[%s1256_s26] sm:$0xff]  ;;  %v329_v19 = vld [vmem:[%s1256_s26 + $0x8] sm:$0xff]  ;;  %v330_v20 = vld [vmem:[%s1256_s26 + $0x10] sm:$0xff] }
  0x14   : > { %s294_s5 = scalar_lea.vmem %s1405_s1, %s1117_s27  ;;  %s1262_s6 = sadd.s32 %s937_s23, %s936_s28  ;;  %1033 = vmatprep.mubr.msk.f32.mxu0 %vm350_vm0, %v328_v0  ;;  %1069 = vmatprep.mubr.msk.f32.mxu1 %vm350_vm0, %v328_v0  ;;  %v331_v21 = vld [vmem:[%s1256_s26 + $0x18] sm:$0xff]  ;;  %v332_v22 = vld [vmem:[%s1256_s26 + $0x20] sm:$0xff]  ;;  %v333_v23 = vld [vmem:[%s1256_s26 + $0x28] sm:$0xff] }
  0x15   : > { %v344_v1 = vld [vmem:[%s294_s5] sm:$0xff]  ;;  %v345_v2 = vld [vmem:[%s294_s5 + $0x8] sm:$0xff]  ;;  %s299_s9 = scalar_lea.vmem %s1406_s2, %s1117_s27  ;;  %v346_v3 = vld [vmem:[%s294_s5 + $0x10] sm:$0xff]  ;;  %s938_s10 = sshll.u32 %s1262_s6, 3 }
  0x16   : > { %v1093_v4 = vpack.c.bf16 %v345_v2, %v344_v1  ;;  %v561_v5 = vld [vmem:[%s299_s9] sm:$0xff]  ;;  %v562_v6 = vld [vmem:[%s299_s9 + $0x8] sm:$0xff]  ;;  %v347_v7 = vld [vmem:[%s294_s5 + $0x18] sm:$0xff]  ;;  %s1318_s13 = scalar_lea.vmem %s1407_s3, %s938_s10  ;;  %s1323_s16 = scalar_lea.vmem %s1408_s4, %s938_s10 }
  0x17   : > { %v1105_v8 = vpack.c.bf16 %v562_v6, %v561_v5  ;;  %v1097_v9 = vpack.c.bf16 %v347_v7, %v346_v3  ;;  %v563_v10 = vld [vmem:[%s299_s9 + $0x10] sm:$0xff]  ;;  %v564_v11 = vld [vmem:[%s299_s9 + $0x18] sm:$0xff]  ;;  %v348_v12 = vld [vmem:[%s294_s5 + $0x20] sm:$0xff] }
  0x18   : > { %1094 = vmatprep.subr.bf16.mxu0 %v1093_v4  ;;  %v1109_v13 = vpack.c.bf16 %v564_v11, %v563_v10  ;;  %v349_v14 = vld [vmem:[%s294_s5 + $0x28] sm:$0xff]  ;;  %v565_v15 = vld [vmem:[%s299_s9 + $0x20] sm:$0xff]  ;;  %v334_v24 = vld [vmem:[%s1256_s26 + $0x30] sm:$0xff] }
  0x19   : > { %v566_v16 = vld [vmem:[%s299_s9 + $0x28] sm:$0xff]  ;;  %1106 = vmatprep.subr.bf16.mxu1 %v1105_v8  ;;  %1096 = vmatpush3.bf16.msra.mxu0 %v1093_v4  ;;  %v1101_v17 = vpack.c.bf16 %v349_v14, %v348_v12  ;;  %v335_v25 = vld [vmem:[%s1256_s26 + $0x38] sm:$0xff]  ;;  %v336_v26 = vld [vmem:[%s1256_s26 + $0x40] sm:$0xff] }
  0x1a   : > { %1108 = vmatpush3.bf16.msra.mxu1 %v1105_v8  ;;  %1098 = vmatprep.subr.bf16.mxu0 %v1097_v9  ;;  %v1113_v18 = vpack.c.bf16 %v566_v16, %v565_v15  ;;  %v337_v27 = vld [vmem:[%s1256_s26 + $0x48] sm:$0xff]  ;;  %v338_v28 = vld [vmem:[%s1256_s26 + $0x50] sm:$0xff]  ;;  %v339_v29 = vld [vmem:[%s1256_s26 + $0x58] sm:$0xff] }
  0x1b   : > { %1110 = vmatprep.subr.bf16.mxu1 %v1109_v13  ;;  %v340_v30 = vld [vmem:[%s1256_s26 + $0x60] sm:$0xff]  ;;  %v341_v31 = vld [vmem:[%s1256_s26 + $0x68] sm:$0xff]  ;;  %v342_v32 = vld [vmem:[%s1256_s26 + $0x70] sm:$0xff] }
  0x1c   : > { %v343_v33 = vld [vmem:[%s1256_s26 + $0x78] sm:$0xff] }
  0x1d   : > { %1100 = vmatpush3.bf16.msra.mxu0 %v1097_v9 }
  0x1e   : > { %1112 = vmatpush3.bf16.msra.mxu1 %v1109_v13  ;;  %1102 = vmatprep.subr.bf16.mxu0 %v1101_v17 }
  0x1f   : > { %1114 = vmatprep.subr.bf16.mxu1 %v1113_v18 }
  0x21   : > { %1104 = vmatpush3.bf16.msra.mxu0 %v1101_v17 }
  0x22   : > { %1116 = vmatpush3.bf16.msra.mxu1 %v1113_v18 }
  0x24   : > { %1034 = vmatmul.mubr.msk.f32.vlgmr.msra.gmra.mrb[0].mxu0 %vm350_vm0, %v329_v19 }
  0x25   : > { %1070 = vmatmul.mubr.msk.f32.vlgmr.msra.gmra.mrb[0].mxu1 %vm350_vm0, %v329_v19  ;;  %1036 = vmatprep.mubr.msk.f32.mxu0 %vm350_vm0, %v330_v20 }
  0x26   : > { %1072 = vmatprep.mubr.msk.f32.mxu1 %vm350_vm0, %v330_v20 }
  0x28   : > { %1037 = vmatmul.mubr.msk.f32.gmra.mrb[2].mxu0 %vm350_vm0, %v331_v21 }
  0x29   : > { %1073 = vmatmul.mubr.msk.f32.gmra.mrb[2].mxu1 %vm350_vm0, %v331_v21  ;;  %1039 = vmatprep.mubr.msk.f32.mxu0 %vm350_vm0, %v332_v22 }
  0x2a   : > { %1075 = vmatprep.mubr.msk.f32.mxu1 %vm350_vm0, %v332_v22 }
  0x2c   : > { %1040 = vmatmul.mubr.msk.f32.gmra.mrb[4].mxu0 %vm350_vm0, %v333_v23 }
  0x2d   : > { %1076 = vmatmul.mubr.msk.f32.gmra.mrb[4].mxu1 %vm350_vm0, %v333_v23  ;;  %1042 = vmatprep.mubr.msk.f32.mxu0 %vm350_vm0, %v334_v24 }
  0x2e   : > { %1078 = vmatprep.mubr.msk.f32.mxu1 %vm350_vm0, %v334_v24 }
  0x30   : > { %1043 = vmatmul.mubr.msk.f32.gmra.mrb[6].mxu0 %vm350_vm0, %v335_v25 }
  0x31   : > { %1079 = vmatmul.mubr.msk.f32.gmra.mrb[6].mxu1 %vm350_vm0, %v335_v25  ;;  %1045 = vmatprep.mubr.msk.f32.mxu0 %vm350_vm0, %v336_v26 }
  0x32   : > { %1081 = vmatprep.mubr.msk.f32.mxu1 %vm350_vm0, %v336_v26 }
  0x34   : > { %1046 = vmatmul.mubr.msk.f32.gmra.mrb[8].mxu0 %vm350_vm0, %v337_v27 }
  0x35   : > { %1082 = vmatmul.mubr.msk.f32.gmra.mrb[8].mxu1 %vm350_vm0, %v337_v27  ;;  %1048 = vmatprep.mubr.msk.f32.mxu0 %vm350_vm0, %v338_v28 }
  0x36   : > { %1084 = vmatprep.mubr.msk.f32.mxu1 %vm350_vm0, %v338_v28 }
  0x38   : > { %1049 = vmatmul.mubr.msk.f32.gmra.mrb[10].mxu0 %vm350_vm0, %v339_v29 }
  0x39   : > { %1085 = vmatmul.mubr.msk.f32.gmra.mrb[10].mxu1 %vm350_vm0, %v339_v29  ;;  %1051 = vmatprep.mubr.msk.f32.mxu0 %vm350_vm0, %v340_v30 }
  0x3a   : > { %1087 = vmatprep.mubr.msk.f32.mxu1 %vm350_vm0, %v340_v30 }
  0x3c   : > { %1052 = vmatmul.mubr.msk.f32.gmra.mrb[12].mxu0 %vm350_vm0, %v341_v31 }
  0x3d   : > { %1088 = vmatmul.mubr.msk.f32.gmra.mrb[12].mxu1 %vm350_vm0, %v341_v31  ;;  %1054 = vmatprep.mubr.msk.f32.mxu0 %vm350_vm0, %v342_v32 }
  0x3e   : > { %1090 = vmatprep.mubr.msk.f32.mxu1 %vm350_vm0, %v342_v32 }
  0x40   : > { %1055 = vmatmul.mubr.msk.f32.gmra.mrb[14].mxu0 %vm350_vm0, %v343_v33 }
  0x41   : > { %1091 = vmatmul.mubr.msk.f32.gmra.mrb[14].mxu1 %vm350_vm0, %v343_v33 }
  0xf7   : > { %v1035_v34 = vpop.f32.mrb[0].mxu0 }
  0xf8   : > { %546 = vst.msk [vmem:[%s1318_s13 + $0x8] sm:$0xff] %vm544_vm1, %v1035_v34  ;;  %v1071_v35 = vpop.f32.mrb[0].mxu1  ;;  %v465_v36 = vpop.f32.mrb[1].mxu0 }
  0xf9   : > { %713 = vst.msk [vmem:[%s1323_s16 + $0x8] sm:$0xff] %vm544_vm1, %v1071_v35  ;;  %545 = vst.msk [vmem:[%s1318_s13] sm:$0xff] %vm544_vm1, %v465_v36  ;;  %v633_v37 = vpop.f32.mrb[1].mxu1 }
  0xfa   : > { %712 = vst.msk [vmem:[%s1323_s16] sm:$0xff] %vm544_vm1, %v633_v37 }
  0xfb   : > { %v1038_v38 = vpop.f32.mrb[2].mxu0 }
  0xfc   : > { %548 = vst.msk [vmem:[%s1318_s13 + $0x18] sm:$0xff] %vm544_vm1, %v1038_v38  ;;  %v1074_v39 = vpop.f32.mrb[2].mxu1  ;;  %v475_v40 = vpop.f32.mrb[3].mxu0 }
  0xfd   : > { %715 = vst.msk [vmem:[%s1323_s16 + $0x18] sm:$0xff] %vm544_vm1, %v1074_v39  ;;  %547 = vst.msk [vmem:[%s1318_s13 + $0x10] sm:$0xff] %vm544_vm1, %v475_v40  ;;  %v643_v41 = vpop.f32.mrb[3].mxu1 }
  0xfe   : > { %714 = vst.msk [vmem:[%s1323_s16 + $0x10] sm:$0xff] %vm544_vm1, %v643_v41 }
  0xff   : > { %v1041_v42 = vpop.f32.mrb[4].mxu0 }
 0x100   : > { %550 = vst.msk [vmem:[%s1318_s13 + $0x28] sm:$0xff] %vm544_vm1, %v1041_v42  ;;  %v1077_v43 = vpop.f32.mrb[4].mxu1  ;;  %v485_v44 = vpop.f32.mrb[5].mxu0 }
 0x101   : > { %717 = vst.msk [vmem:[%s1323_s16 + $0x28] sm:$0xff] %vm544_vm1, %v1077_v43  ;;  %549 = vst.msk [vmem:[%s1318_s13 + $0x20] sm:$0xff] %vm544_vm1, %v485_v44  ;;  %v653_v45 = vpop.f32.mrb[5].mxu1 }
 0x102   : > { %716 = vst.msk [vmem:[%s1323_s16 + $0x20] sm:$0xff] %vm544_vm1, %v653_v45 }
 0x103   : > { %v1044_v46 = vpop.f32.mrb[6].mxu0 }
 0x104   : > { %552 = vst.msk [vmem:[%s1318_s13 + $0x38] sm:$0xff] %vm544_vm1, %v1044_v46  ;;  %v1080_v47 = vpop.f32.mrb[6].mxu1  ;;  %v495_v48 = vpop.f32.mrb[7].mxu0 }
 0x105   : > { %719 = vst.msk [vmem:[%s1323_s16 + $0x38] sm:$0xff] %vm544_vm1, %v1080_v47  ;;  %551 = vst.msk [vmem:[%s1318_s13 + $0x30] sm:$0xff] %vm544_vm1, %v495_v48  ;;  %v663_v49 = vpop.f32.mrb[7].mxu1 }
 0x106   : > { %718 = vst.msk [vmem:[%s1323_s16 + $0x30] sm:$0xff] %vm544_vm1, %v663_v49 }
 0x107   : > { %v1047_v50 = vpop.f32.mrb[8].mxu0 }
 0x108   : > { %554 = vst.msk [vmem:[%s1318_s13 + $0x48] sm:$0xff] %vm544_vm1, %v1047_v50  ;;  %v1083_v51 = vpop.f32.mrb[8].mxu1  ;;  %v505_v52 = vpop.f32.mrb[9].mxu0 }
 0x109   : > { %721 = vst.msk [vmem:[%s1323_s16 + $0x48] sm:$0xff] %vm544_vm1, %v1083_v51  ;;  %553 = vst.msk [vmem:[%s1318_s13 + $0x40] sm:$0xff] %vm544_vm1, %v505_v52  ;;  %v673_v53 = vpop.f32.mrb[9].mxu1 }
 0x10a   : > { %720 = vst.msk [vmem:[%s1323_s16 + $0x40] sm:$0xff] %vm544_vm1, %v673_v53 }
 0x10b   : > { %v1050_v54 = vpop.f32.mrb[10].mxu0 }
 0x10c   : > { %556 = vst.msk [vmem:[%s1318_s13 + $0x58] sm:$0xff] %vm544_vm1, %v1050_v54  ;;  %v1086_v55 = vpop.f32.mrb[10].mxu1  ;;  %v515_v56 = vpop.f32.mrb[11].mxu0 }
 0x10d   : > { %723 = vst.msk [vmem:[%s1323_s16 + $0x58] sm:$0xff] %vm544_vm1, %v1086_v55  ;;  %555 = vst.msk [vmem:[%s1318_s13 + $0x50] sm:$0xff] %vm544_vm1, %v515_v56  ;;  %v683_v57 = vpop.f32.mrb[11].mxu1 }
 0x10e   : > { %722 = vst.msk [vmem:[%s1323_s16 + $0x50] sm:$0xff] %vm544_vm1, %v683_v57 }
 0x10f   : > { %v1053_v58 = vpop.f32.mrb[12].mxu0 }
 0x110   : > { %558 = vst.msk [vmem:[%s1318_s13 + $0x68] sm:$0xff] %vm544_vm1, %v1053_v58  ;;  %v1089_v59 = vpop.f32.mrb[12].mxu1  ;;  %v525_v60 = vpop.f32.mrb[13].mxu0 }
 0x111   : > { %725 = vst.msk [vmem:[%s1323_s16 + $0x68] sm:$0xff] %vm544_vm1, %v1089_v59  ;;  %557 = vst.msk [vmem:[%s1318_s13 + $0x60] sm:$0xff] %vm544_vm1, %v525_v60  ;;  %v693_v61 = vpop.f32.mrb[13].mxu1 }
 0x112   : > { %724 = vst.msk [vmem:[%s1323_s16 + $0x60] sm:$0xff] %vm544_vm1, %v693_v61 }
 0x113   : > { %v1056_v62 = vpop.f32.mrb[14].mxu0 }
 0x114   : > { %560 = vst.msk [vmem:[%s1318_s13 + $0x78] sm:$0xff] %vm544_vm1, %v1056_v62  ;;  %v1092_v63 = vpop.f32.mrb[14].mxu1  ;;  %v535_v0 = vpop.f32.mrb[15].mxu0 }
 0x115   : > { %727 = vst.msk [vmem:[%s1323_s16 + $0x78] sm:$0xff] %vm544_vm1, %v1092_v63  ;;  %559 = vst.msk [vmem:[%s1318_s13 + $0x70] sm:$0xff] %vm544_vm1, %v535_v0  ;;  %v703_v1 = vpop.f32.mrb[15].mxu1 }
 0x116   : > { %726 = vst.msk [vmem:[%s1323_s16 + $0x70] sm:$0xff] %vm544_vm1, %v703_v1 }
 0x117 PF: > { %s15_s19 = sadd.s32 1, %s1196_s19   ;;  %s1409_s15 = smov %s1188_s17 }
 0x118   : > { %p12_p7 = scmp.ge.s32.totalorder %s15_s19, 6   ;;  %s1410_s16 = smov %s1192_s18 }
 0x119   : > { %s1411_s17 = smov %s1414_s20  ;;  %s1412_s18 = smov %s1418_s21 }
 0x11a   :  { %14 = sbr.rel (!%p12_p7) target bundleno = 3 (0x3), region = 80 }

</bundles_post_ra>
